<compile_context>
chip_gen: v7x
topology: tpu7x:2x2x1
jax: 0.10.0
libtpu: 0.0.40
codegen_flags: <defaults>
</compile_context>

<pallas_src>
import jax
import jax.numpy as jnp
from jax.experimental import pallas as pl
from jax.experimental.pallas import tpu as pltpu


def _linear_relu_kernel(x_ref, w_ref, b_ref, o_ref, acc_ref):
    """One (tm, tn) output tile; K is reduced across grid axis 2."""
    k = pl.program_id(2)

    @pl.when(k == 0)
    def _init():
        acc_ref[...] = jnp.zeros_like(acc_ref)

    # MXU matmul (bf16 operands, f32 accumulation).
    acc_ref[...] += jnp.dot(x_ref[...], w_ref[...],
                            preferred_element_type=jnp.float32)

    # Bias add + ReLU once per output tile, on the f32 accumulator.
    @pl.when(k == pl.num_programs(2) - 1)
    def _finalize():
        y = acc_ref[...] + b_ref[...]          # (1, tn) broadcasts over rows
        o_ref[...] = jnp.maximum(y, 0.0).astype(o_ref.dtype)


def _round_up(v, m):
    return (v + m - 1) // m * m


def linear_relu_pallas(x, w, b, *, compute_dtype=jnp.bfloat16,
                       tm_max=128, tn=128, tk_max=512):
    """relu(x @ w + b) with a tiled Pallas TPU kernel.

    Pads M to a multiple of 8 (and of tm), N/K to multiples of 128 (lane-dense
    stores, (8,128)-aligned tiles), runs the grid kernel, then slices back.
    Padding is a no-op when shapes are already aligned.
    """
    B, K = x.shape
    K2, N = w.shape
    assert K == K2 and b.shape == (N,)
    out_dtype = x.dtype

    # Cast MXU operands to bf16 (accuracy preserved by f32 accumulation).
    x = x.astype(compute_dtype)
    w = w.astype(compute_dtype)
    b = b.astype(jnp.float32)

    # Tile sizes / padded shapes.
    Mp = _round_up(B, 8)
    tm = min(Mp, tm_max)
    Mp = _round_up(Mp, tm)

    Np = _round_up(N, tn)

    Kp = _round_up(K, 128)
    tk = min(Kp, tk_max)
    Kp = _round_up(Kp, tk)

    xp = x if (Mp == B and Kp == K) else jnp.pad(x, ((0, Mp - B), (0, Kp - K)))
    wp = w if (Kp == K and Np == N) else jnp.pad(w, ((0, Kp - K), (0, Np - N)))
    bp = (b if Np == N else jnp.pad(b, (0, Np - N))).reshape(1, Np)

    grid = (Mp // tm, Np // tn, Kp // tk)

    flops = 2 * Mp * Np * Kp
    bytes_accessed = (xp.size * xp.dtype.itemsize
                      + wp.size * wp.dtype.itemsize
                      + bp.size * bp.dtype.itemsize
                      + Mp * Np * jnp.dtype(out_dtype).itemsize)

    out = pl.pallas_call(
        _linear_relu_kernel,
        out_shape=jax.ShapeDtypeStruct((Mp, Np), out_dtype),
        grid=grid,
        in_specs=[
            pl.BlockSpec((tm, tk), lambda i, j, k: (i, k)),   # x tile
            pl.BlockSpec((tk, tn), lambda i, j, k: (k, j)),   # w tile
            pl.BlockSpec((1, tn), lambda i, j, k: (0, j)),    # bias tile
        ],
        out_specs=pl.BlockSpec((tm, tn), lambda i, j, k: (i, j)),
        scratch_shapes=[pltpu.VMEM((tm, tn), jnp.float32)],
        compiler_params=pltpu.CompilerParams(
            dimension_semantics=("parallel", "parallel", "arbitrary"),
            vmem_limit_bytes=32 * 1024 * 1024,   # safe on v5e/v6e and v7x (64 MiB VMEM)
        ),
        cost_estimate=pl.CostEstimate(
            flops=flops, transcendentals=0, bytes_accessed=bytes_accessed),
    )(xp, wp, bp)

    if Mp == B and Np == N:
        return out
    return out[:B, :N]


class ConditionalModel:
    """JAX/Pallas port of models.utils.ConditionalModel."""

    def __init__(self, model, state):
        self.model = model
        self.state = state

    def __call__(self, input, **kwargs):
        # Exact semantics of the PyTorch forward: call the wrapped model only
        # when `state` is truthy, otherwise return None (no device work).
        return self.model(input, **kwargs) if self.state else None


def _reference_linear_relu(x, w, b):
    """Reference with the same bf16-operand / f32-accumulate numerics."""
    acc = jax.lax.dot_general(
        x.astype(jnp.bfloat16), w.astype(jnp.bfloat16),
        (((1,), (0,)), ((), ())), preferred_element_type=jnp.float32)
    return jnp.maximum(acc + b, 0.0)


if __name__ == "__main__":
    key = jax.random.PRNGKey(0)
    k_x, k_w, k_b, k_x2, k_w2, k_b2 = jax.random.split(key, 6)

    # Small but TPU-aligned shapes: B multiple of 8, F_out multiple of 128
    # (lane-dense output stores), F_in multiple of 128.
    B, F_in, F_out = 8, 256, 128
    x = jax.random.normal(k_x, (B, F_in), dtype=jnp.float32)
    w = jax.random.normal(k_w, (F_in, F_out), dtype=jnp.float32) * 0.1
    b = jax.random.normal(k_b, (F_out,), dtype=jnp.float32) * 0.1

    # The wrapped "model": Linear+ReLU whose hot path runs in the Pallas kernel.
    inner_model = lambda inp: linear_relu_pallas(inp, w, b)

    # state=True path: runs the kernel.
    cond_on = ConditionalModel(inner_model, state=True)
    y = jax.block_until_ready(cond_on(x))
    y_ref = _reference_linear_relu(x, w, b)
    assert y.shape == (B, F_out) and y.dtype == x.dtype
    assert jnp.allclose(y, y_ref, atol=1e-2, rtol=1e-2)

    # Unaligned shapes exercise the pad-and-slice path of the wrapper.
    B2, F_in2, F_out2 = 5, 100, 70
    x2 = jax.random.normal(k_x2, (B2, F_in2), dtype=jnp.float32)
    w2 = jax.random.normal(k_w2, (F_in2, F_out2), dtype=jnp.float32) * 0.1
    b2 = jax.random.normal(k_b2, (F_out2,), dtype=jnp.float32) * 0.1
    y2 = jax.block_until_ready(linear_relu_pallas(x2, w2, b2))
    assert y2.shape == (B2, F_out2)
    assert jnp.allclose(y2, _reference_linear_relu(x2, w2, b2),
                        atol=1e-2, rtol=1e-2)

    # state=False path: returns None without any device work.
    cond_off = ConditionalModel(inner_model, state=False)
    assert cond_off(x) is None

    print("KERNEL_OK")
</pallas_src>

<mosaic_0001>
module attributes {stable_mosaic.version = 11 : i64} {
  func.func @_linear_relu_kernel(%arg0: i32, %arg1: i32, %arg2: i32, %arg3: memref<8x256xbf16, #tpu.memory_space<vmem>>, %arg4: memref<256x128xbf16, #tpu.memory_space<vmem>>, %arg5: memref<1x128xf32, #tpu.memory_space<vmem>>, %arg6: memref<8x128xf32, #tpu.memory_space<vmem>>, %arg7: memref<8x128xf32, #tpu.memory_space<vmem>>) attributes {dimension_semantics = [#tpu.dimension_semantics<parallel>, #tpu.dimension_semantics<parallel>, #tpu.dimension_semantics<arbitrary>], iteration_bounds = array<i64: 1, 1, 1>, scalar_prefetch = 0 : i64, scratch_operands = 1 : i64, tpu.core_type = #tpu.core_type<tc>, window_params = [{transform_indices = @transform_0, window_bounds = array<i64: 8, 256>}, {transform_indices = @transform_1, window_bounds = array<i64: 256, 128>}, {transform_indices = @transform_2, window_bounds = array<i64: 1, 128>}, {transform_indices = @transform_3, window_bounds = array<i64: 8, 128>}]} {
    %c0_i32 = arith.constant 0 : i32
    %0 = arith.cmpi eq, %arg2, %c0_i32 : i32
    %1 = arith.extui %0 : i1 to i32
    %c0_i32_0 = arith.constant 0 : i32
    %2 = arith.cmpi ne, %1, %c0_i32_0 : i32
    scf.if %2 {
      %cst_10 = arith.constant 0.000000e+00 : f32
      %12 = vector.broadcast %cst_10 : f32 to vector<8x128xf32>
      %c0_11 = arith.constant 0 : index
      %c0_12 = arith.constant 0 : index
      %13 = vector.load %arg7[%c0_11, %c0_12] : memref<8x128xf32, #tpu.memory_space<vmem>>, vector<8x128xf32>
      tpu.vector_store %arg7[%c0_11, %c0_12], %12 {strides = array<i32>} : memref<8x128xf32, #tpu.memory_space<vmem>>, vector<8x128xf32>,
    } else {
    }
    %c0 = arith.constant 0 : index
    %c0_1 = arith.constant 0 : index
    %3 = vector.load %arg7[%c0, %c0_1] : memref<8x128xf32, #tpu.memory_space<vmem>>, vector<8x128xf32>
    %c0_2 = arith.constant 0 : index
    %c0_3 = arith.constant 0 : index
    %4 = vector.load %arg3[%c0_2, %c0_3] : memref<8x256xbf16, #tpu.memory_space<vmem>>, vector<8x256xbf16>
    %c0_4 = arith.constant 0 : index
    %c0_5 = arith.constant 0 : index
    %5 = vector.load %arg4[%c0_4, %c0_5] : memref<256x128xbf16, #tpu.memory_space<vmem>>, vector<256x128xbf16>
    %cst = arith.constant dense<0.000000e+00> : vector<8x128xf32>
    %6 = tpu.matmul %4, %5, %cst {dimension_numbers = #tpu.dot_dimension_numbers<[1], [0], [0], [1], [0, 0, 1, 1], [], []>} : vector<8x256xbf16>, vector<256x128xbf16>, vector<8x128xf32> -> vector<8x128xf32>
    %7 = arith.addf %3, %6 : vector<8x128xf32>
    %c0_6 = arith.constant 0 : index
    %c0_7 = arith.constant 0 : index
    %8 = vector.load %arg7[%c0_6, %c0_7] : memref<8x128xf32, #tpu.memory_space<vmem>>, vector<8x128xf32>
    tpu.vector_store %arg7[%c0_6, %c0_7], %7 {strides = array<i32>} : memref<8x128xf32, #tpu.memory_space<vmem>>, vector<8x128xf32>,
    %c0_i32_8 = arith.constant 0 : i32
    %9 = arith.cmpi eq, %arg2, %c0_i32_8 : i32
    %10 = arith.extui %9 : i1 to i32
    %c0_i32_9 = arith.constant 0 : i32
    %11 = arith.cmpi ne, %10, %c0_i32_9 : i32
    scf.if %11 {
      %c0_10 = arith.constant 0 : index
      %c0_11 = arith.constant 0 : index
      %12 = vector.load %arg7[%c0_10, %c0_11] : memref<8x128xf32, #tpu.memory_space<vmem>>, vector<8x128xf32>
      %c0_12 = arith.constant 0 : index
      %c0_13 = arith.constant 0 : index
      %13 = vector.load %arg5[%c0_12, %c0_13] : memref<1x128xf32, #tpu.memory_space<vmem>>, vector<1x128xf32>
      %14 = vector.broadcast %13 : vector<1x128xf32> to vector<8x128xf32>
      %15 = arith.addf %12, %14 : vector<8x128xf32>
      %cst_14 = arith.constant 0.000000e+00 : f32
      %16 = vector.broadcast %cst_14 : f32 to vector<8x128xf32>
      %17 = arith.maximumf %15, %16 : vector<8x128xf32>
      %c0_15 = arith.constant 0 : index
      %c0_16 = arith.constant 0 : index
      %18 = vector.load %arg6[%c0_15, %c0_16] : memref<8x128xf32, #tpu.memory_space<vmem>>, vector<8x128xf32>
      tpu.vector_store %arg6[%c0_15, %c0_16], %17 {strides = array<i32>} : memref<8x128xf32, #tpu.memory_space<vmem>>, vector<8x128xf32>,
    } else {
    }
    return
  }
  func.func @transform_0(%arg0: i32, %arg1: i32, %arg2: i32) -> (i32, i32) {
    %c0_i32 = arith.constant 0 : i32
    return %arg0, %arg2 : i32, i32
  }
  func.func @transform_1(%arg0: i32, %arg1: i32, %arg2: i32) -> (i32, i32) {
    %c0_i32 = arith.constant 0 : i32
    return %arg2, %arg1 : i32, i32
  }
  func.func @transform_2(%arg0: i32, %arg1: i32, %arg2: i32) -> (i32, i32) {
    %c0_i32 = arith.constant 0 : i32
    %c0_i32_0 = arith.constant 0 : i32
    return %c0_i32, %arg1 : i32, i32
  }
  func.func @transform_3(%arg0: i32, %arg1: i32, %arg2: i32) -> (i32, i32) {
    %c0_i32 = arith.constant 0 : i32
    return %arg0, %arg1 : i32, i32
  }
}

</mosaic_0001>

<bundles_post_ra>
// kernel: tpu_custom_call.1
= control target key start
LH: loop header
LB: loop body
LE: loop exit
PB: predicated region body
PF: predicated region fallthrough
CT: control target
= control target key end

     0   :  { %8 = vsyncpa [#allocation4], 0  ;;  %s463_s0 = inlined_call_operand.hbm [shape: bf16[8,256], index: 0, kind: input, shape index: {}]   ;;  %s464_s1 = inlined_call_operand.hbm [shape: bf16[256,128], index: 1, kind: input, shape index: {}]   ;;  %s465_s2 = inlined_call_operand.vmem [shape: f32[1,128], index: 2, kind: input, shape index: {}]   ;;  %s466_s3 = inlined_call_operand.hbm [shape: f32[8,128], index: 3, kind: output, shape index: {}]  }
   0x1   :  { %9 = vsyncpa [#allocation7], 0 }
   0x2   :  { %10 = vsyncpa [#allocation5], 0  ;;  %s392_s12 = smov [#allocation3]   ;;  %s393_s14 = smov [#allocation6]  }
   0x3   :  { %s17_s13 = sshll.u32 %s392_s12, 4  ;;  %s26_s15 = sshll.u32 %s393_s14, 4  ;;  %s18_s13 = int_to_ptr.vmem [resolvable:$true] %s17_s13  ;;  %s417_s15 = int_to_ptr.vmem [resolvable:$true] %s26_s15 }
   0x4   :  { %s320_s18 = scalar_lea.hbm %s463_s0, 128 }
   0x5   :  { %p321_p0 = scmp.ne.s32.totalorder %s463_s0, %s320_s18  ;;  %p324_p1 = scmp.lt.u32.totalorder %s320_s18, %s463_s0 }
   0x7   :  { %p326_p2 = pnand %p324_p1, %p321_p0 }
   0x9   :  { %329 = shalt.err (!%p326_p2)
}
   0xa   :  { %s330_s23 = scalar_lea.vmem %s18_s13, 128  ;;  %p335_p4 = scmp.lt.s32.totalorder %s18_s13, %s18_s13 }
   0xb   :  { %p331_p3 = scmp.ne.s32.totalorder %s18_s13, %s330_s23  ;;  %p336_p5 = scmp.lt.s32.totalorder %s330_s23, %s330_s23 }
   0xd   :  { %p337_p6 = por %p336_p5, %p335_p4 }
   0xf   :  { %p338_p7 = pnand %p337_p6, %p331_p3 }
  0x11   :  { %341 = shalt.err (!%p338_p7)
}
  0x12   :  { %20 = dma.hbm_to_vmem [thread:$0]  %s463_s0, 128, %s18_s13, [#allocation4]  }
  0x13   :  { %s342_s28 = scalar_lea.hbm %s464_s1, 2048 }
  0x14   :  { %p343_p8 = scmp.ne.s32.totalorder %s464_s1, %s342_s28  ;;  %p346_p9 = scmp.lt.u32.totalorder %s342_s28, %s464_s1 }
  0x16   :  { %p348_p10 = pnand %p346_p9, %p343_p8 }
  0x18   :  { %351 = shalt.err (!%p348_p10)
}
  0x19   :  { %s352_s6 = scalar_lea.vmem %s417_s15, 2048  ;;  %p357_p12 = scmp.lt.s32.totalorder %s417_s15, %s417_s15 }
  0x1a   :  { %p353_p11 = scmp.ne.s32.totalorder %s417_s15, %s352_s6  ;;  %p358_p13 = scmp.lt.s32.totalorder %s352_s6, %s352_s6 }
  0x1c   :  { %p359_p0 = por %p358_p13, %p357_p12 }
  0x1e   :  { %p360_p1 = pnand %p359_p0, %p353_p11 }
  0x20   :  { %363 = shalt.err (!%p360_p1)
}
  0x21   :  { %s394_s0 = smov 64   ;;  %s395_s7 = smov 4  }
  0x22   :  { %32 = dma.hbm_to_vmem [thread:$0]  %s464_s1, 2048, %s417_s15, [#allocation7], %s394_s0, %s394_s0, %s395_s7  }
  0x23   :  { %386 = dma.done.wait [#allocation4], 128  }
  0x24   :  { %387 = vsyncadd [#allocation4], 4294967168 }
  0x25   :  { %388 = dma.done.wait [#allocation7], 2048  }
  0x26   :  { %389 = vsyncadd [#allocation7], 4294965248  ;;  %v302_v0 = vld [vmem:[#allocation6 + $0x40] sm:$0xff]   ;;  %v304_v2 = vld [vmem:[#allocation6 + $0x48] sm:$0xff]   ;;  %s396_s11 = smov [#allocation8]  }
  0x27   :  { %v303_v1 = vld [vmem:[#allocation6] sm:$0xff]   ;;  %275 = vmatprep.subr.bf16.mxu0 %v302_v0  ;;  %v305_v3 = vld [vmem:[#allocation6 + $0x8] sm:$0xff]   ;;  %v306_v4 = vld [vmem:[#allocation6 + $0x50] sm:$0xff]   ;;  %s246_s12 = sshll.u32 %s396_s11, 4  ;;  %s247_s12 = int_to_ptr.vmem [resolvable:$true] %s246_s12 }
  0x28   :  { %276 = vmatpush3.bf16.msra.mxu0 %v303_v1  ;;  %v307_v5 = vld [vmem:[#allocation6 + $0x10] sm:$0xff]   ;;  %v308_v6 = vld [vmem:[#allocation6 + $0x58] sm:$0xff]   ;;  %v310_v8 = vld [vmem:[#allocation6 + $0x60] sm:$0xff]   ;;  %s364_s13 = scalar_lea.vmem %s247_s12, 128  ;;  %p369_p3 = scmp.lt.s32.totalorder %s247_s12, %s247_s12 }
  0x29   :  { %277 = vmatprep.subr.bf16.mxu0 %v304_v2  ;;  %v309_v7 = vld [vmem:[#allocation6 + $0x18] sm:$0xff]   ;;  %v311_v9 = vld [vmem:[#allocation6 + $0x20] sm:$0xff]   ;;  %v312_v10 = vld [vmem:[#allocation6 + $0x68] sm:$0xff]   ;;  %p365_p2 = scmp.ne.s32.totalorder %s247_s12, %s364_s13  ;;  %p370_p4 = scmp.lt.s32.totalorder %s364_s13, %s364_s13 }
  0x2a   :  { %v48_v11 = vld [vmem:[#allocation3] sm:$0xff]  ;;  %v313_v13 = vld [vmem:[#allocation6 + $0x28] sm:$0xff]   ;;  %v314_v14 = vld [vmem:[#allocation6 + $0x70] sm:$0xff]  }
  0x2b   :  { %v257_v12 = vcombine.high %v48_v11, %v48_v11  ;;  %v315_v15 = vld [vmem:[#allocation6 + $0x30] sm:$0xff]   ;;  %v316_v16 = vld [vmem:[#allocation6 + $0x78] sm:$0xff]   ;;  %v256_v18 = vcombine.low %v48_v11, %v48_v11  ;;  %p371_p5 = por %p370_p4, %p369_p3 }
  0x2c   :  { %278 = vmatpush3.bf16.msra.mxu0 %v305_v3  ;;  %v317_v17 = vld [vmem:[#allocation6 + $0x38] sm:$0xff]  }
  0x2d   :  { %279 = vmatprep.subr.bf16.mxu0 %v306_v4  ;;  %216 = vmatprep.mubr.bf16.mxu0 %v257_v12  ;;  %v274_v21 = vld [vmem:[%s465_s2] ss:$0 sm:$0xff]  ;;  %p372_p6 = pnand %p371_p5, %p365_p2 }
  0x30   :  { %280 = vmatpush3.bf16.msra.mxu0 %v307_v5 }
  0x31   :  { %281 = vmatprep.subr.bf16.mxu0 %v308_v6 }
  0x34   :  { %282 = vmatpush3.bf16.msra.mxu0 %v309_v7 }
  0x35   :  { %283 = vmatprep.subr.bf16.mxu0 %v310_v8 }
  0x38   :  { %284 = vmatpush3.bf16.msra.mxu0 %v311_v9 }
  0x39   :  { %285 = vmatprep.subr.bf16.mxu0 %v312_v10 }
  0x3c   :  { %286 = vmatpush3.bf16.msra.mxu0 %v313_v13 }
  0x3d   :  { %287 = vmatprep.subr.bf16.mxu0 %v314_v14 }
  0x40   :  { %288 = vmatpush3.bf16.msra.mxu0 %v315_v15 }
  0x41   :  { %289 = vmatprep.subr.bf16.mxu0 %v316_v16 }
  0x44   :  { %290 = vmatpush3.bf16.msra.mxu0 %v317_v17 }
  0x47   :  { %217 = vmatmul.mubr.bf16.vlgmr.msra.gmra.mrb[0].mxu0 %v256_v18 }
 0x11a   :  { %v291_v19 = vpop.f32.mrb[0].mxu0 }
 0x11b   :  { %v292_v20 = vpop.f32.mrb[1].mxu0 }
 0x11c   :  { %v293_v22 = vadd.f32 %v292_v20, %v291_v19  ;;  %v294_v23 = vpop.f32.mrb[2].mxu0 }
 0x11d   :  { %v295_v24 = vpop.f32.mrb[3].mxu0 }
 0x11e   :  { %v237_v25 = vadd.f32 %v293_v22, %v274_v21 }
 0x120   :  { %v238_v26 = vmax.f32 %v237_v25, 0.0 }
 0x122   :  { %239 = vst [vmem:[#allocation8] sm:$0xff] %v238_v26 }
 0x123   :  { %375 = shalt.err (!%p372_p6)
}
 0x124   :  { %s376_s2 = scalar_lea.hbm %s466_s3, 128 }
 0x125   :  { %p377_p7 = scmp.ne.s32.totalorder %s466_s3, %s376_s2  ;;  %p380_p8 = scmp.lt.u32.totalorder %s376_s2, %s466_s3 }
 0x127   :  { %p382_p9 = pnand %p380_p8, %p377_p7 }
 0x129   :  { %385 = shalt.err (!%p382_p9)
}
 0x12a   :  { %249 = dma.vmem_to_hbm [thread:$0]  %s247_s12, 128, %s466_s3, [#allocation5]  }
 0x12b   :  { %390 = dma.done.wait [#allocation5], 128  }
 0x12c   :  { %391 = vsyncadd [#allocation5], 4294967168 }
 0x12d   :  { %253 = vsyncpa [#allocation4], 1 }
 0x12e   :  { %254 = vsyncpa [#allocation7], 1 }
 0x12f   :  { %255 = vsyncpa [#allocation5], 1 }

</bundles_post_ra>
